<compile_context>
chip_gen: v7x
topology: tpu7x:2x2x1
jax: 0.10.0
libtpu: 0.0.40
codegen_flags: <defaults>
</compile_context>

<pallas_src>
import jax
import jax.numpy as jnp
from jax.experimental import pallas as pl
from jax.experimental.pallas import tpu as pltpu


def _round_up(x, m):
    return (x + m - 1) // m * m


def ncf_kernel(x_ref, w1_ref, b1_ref, w2_ref, b2_ref,
               w3f_ref, wf_ref, bf_ref, out_ref):
    # x_ref: (2E, tb) bf16, feature-major packed [user ; item] embeddings.
    x = x_ref[...]
    e = x_ref.shape[0] // 2

    # GMF branch (elementwise, lane-dense over the batch).
    u = x[:e, :].astype(jnp.float32)        # (E, tb)
    it = x[e:, :].astype(jnp.float32)       # (E, tb)
    gmf = u * it                            # (E, tb) f32

    # MLP branch, layer 1 as one merged dot: relu(w1^T @ [u;it] + b1).
    h1 = jnp.dot(w1_ref[...], x, preferred_element_type=jnp.float32) + b1_ref[...]
    h1 = jnp.maximum(h1, 0.0)               # (H, tb) f32

    h2 = jnp.dot(w2_ref[...], h1.astype(jnp.bfloat16),
                 preferred_element_type=jnp.float32) + b2_ref[...]
    h2 = jnp.maximum(h2, 0.0)               # (H//2, tb) f32

    # Folded final layer:
    #   logits = gmf^T wf + h2^T (w3 wf) + (b3 wf + bf)
    # -> two sublane reductions into a lane-dense (1, tb) row.
    logits = (jnp.sum(gmf * wf_ref[...], axis=0, keepdims=True)
              + jnp.sum(h2 * w3f_ref[...], axis=0, keepdims=True)
              + bf_ref[0, 0])               # (1, tb) f32
    out_ref[...] = jax.nn.sigmoid(logits)


def ncf_forward(user_indices, item_indices, params, *, tile_b=4096):
    """Embedding gather (glue) + feature-major, batch-tiled Pallas kernel."""
    E = params["user_emb"].shape[1]
    H = params["w1"].shape[1]
    H2 = params["w2"].shape[1]
    B = user_indices.shape[0]

    # Tile: multiple of 128 (lane-dense output), capped so moderate batches get
    # >= 2 grid steps (v7x dual-TensorCore sharding of the "parallel" axis).
    half = -(-B // 2)
    tb = min(tile_b, max(128, _round_up(half, 128)))
    Bp = _round_up(B, tb)

    # Pad only the (B,) index vectors (trivial) — never the gathered embeddings.
    if Bp != B:
        pad = Bp - B
        user_indices = jnp.pad(user_indices, (0, pad))
        item_indices = jnp.pad(item_indices, (0, pad))

    # Row gather + pack + transpose + bf16 cast (XLA fuses these; small stream).
    u = jnp.take(params["user_emb"], user_indices, axis=0)      # (Bp, E)
    it = jnp.take(params["item_emb"], item_indices, axis=0)     # (Bp, E)
    x_fm = jnp.concatenate([u, it], axis=-1).T.astype(jnp.bfloat16)  # (2E, Bp)

    # Wrapper-side weight preparation / algebraic folds (done once per call).
    w1t = params["w1"].T.astype(jnp.bfloat16)                   # (H, 2E)
    b1c = params["b1"].reshape(H, 1)                            # (H, 1) f32
    w2t = params["w2"].T.astype(jnp.bfloat16)                   # (H2, H)
    b2c = params["b2"].reshape(H2, 1)                           # (H2, 1) f32
    w3fc = (params["w3"] @ params["wf"]).reshape(H2, 1)         # (H2, 1) f32
    wfc = params["wf"].reshape(E, 1)                            # (E, 1) f32
    bf_fold = (params["b3"] @ params["wf"] + params["bf"]).reshape(1, 1)

    grid = (Bp // tb,)

    def resident(shape):
        # Same block index every grid step => stays VMEM-resident (no re-DMA).
        return pl.BlockSpec(shape, lambda b: (0, 0))

    out = pl.pallas_call(
        ncf_kernel,
        out_shape=jax.ShapeDtypeStruct((1, Bp), jnp.float32),
        grid=grid,
        in_specs=[
            pl.BlockSpec((2 * E, tb), lambda b: (0, b)),         # streamed input
            resident((H, 2 * E)), resident((H, 1)),
            resident((H2, H)), resident((H2, 1)),
            resident((H2, 1)), resident((E, 1)),
            pl.BlockSpec(memory_space=pltpu.MemorySpace.SMEM),   # folded scalar bias
        ],
        out_specs=pl.BlockSpec((1, tb), lambda b: (0, b)),
        compiler_params=pltpu.CompilerParams(
            dimension_semantics=("parallel",)),
    )(x_fm, w1t, b1c, w2t, b2c, w3fc, wfc, bf_fold)

    return out[0, :B]


def init_params(key, num_users, num_items, embed_dim=16, hidden_dim=64):
    ks = jax.random.split(key, 10)

    def lin(kw, kb, fan_in, fan_out):
        # Kaiming-uniform-ish deterministic init, stored as (in, out).
        bound = 1.0 / jnp.sqrt(fan_in)
        w = jax.random.uniform(kw, (fan_in, fan_out), jnp.float32, -bound, bound)
        b = jax.random.uniform(kb, (1, fan_out), jnp.float32, -bound, bound)
        return w, b

    user_emb = jax.random.normal(ks[0], (num_users, embed_dim), jnp.float32)
    item_emb = jax.random.normal(ks[1], (num_items, embed_dim), jnp.float32)
    w1, b1 = lin(ks[2], ks[3], embed_dim * 2, hidden_dim)
    w2, b2 = lin(ks[4], ks[5], hidden_dim, hidden_dim // 2)
    w3, b3 = lin(ks[6], ks[7], hidden_dim // 2, embed_dim)
    wf, bf = lin(ks[8], ks[9], embed_dim, 1)

    return dict(user_emb=user_emb, item_emb=item_emb,
                w1=w1, b1=b1, w2=w2, b2=b2, w3=w3, b3=b3, wf=wf, bf=bf)


def ncf_reference(user_indices, item_indices, params):
    """Pure-JAX f32 reference mirroring the PyTorch forward (unfolded)."""
    u = jnp.take(params["user_emb"], user_indices, axis=0)
    it = jnp.take(params["item_emb"], item_indices, axis=0)
    gmf = u * it
    x = jnp.concatenate([u, it], axis=-1)
    h1 = jnp.maximum(x @ params["w1"] + params["b1"], 0.0)
    h2 = jnp.maximum(h1 @ params["w2"] + params["b2"], 0.0)
    mlp = h2 @ params["w3"] + params["b3"]
    logits = (gmf + mlp) @ params["wf"] + params["bf"]
    return jnp.squeeze(jax.nn.sigmoid(logits), axis=-1)


if __name__ == "__main__":
    num_users, num_items = 10, 20
    embed_dim, hidden_dim = 16, 64

    key = jax.random.PRNGKey(0)
    kp, ku, ki, ku2, ki2 = jax.random.split(key, 5)
    params = init_params(kp, num_users, num_items, embed_dim, hidden_dim)

    # bf16 matmul inputs vs. f32 reference -> loosened tolerances (review note).
    ATOL = 2e-2

    # Small single-tile case (batch padded to one 128-column tile).
    batch = 8
    user_idx = jax.random.randint(ku, (batch,), 0, num_users, dtype=jnp.int32)
    item_idx = jax.random.randint(ki, (batch,), 0, num_items, dtype=jnp.int32)
    out = jax.block_until_ready(ncf_forward(user_idx, item_idx, params))
    ref = ncf_reference(user_idx, item_idx, params)
    assert out.shape == (batch,)
    assert jnp.allclose(out, ref, atol=ATOL, rtol=ATOL), (out, ref)

    # Multi-tile case: exercises the batch grid (>=2 steps), resident weights
    # and the index-padded ragged tail (300 rows -> 2 tiles of 256).
    batch2 = 300
    user_idx2 = jax.random.randint(ku2, (batch2,), 0, num_users, dtype=jnp.int32)
    item_idx2 = jax.random.randint(ki2, (batch2,), 0, num_items, dtype=jnp.int32)
    out2 = jax.block_until_ready(ncf_forward(user_idx2, item_idx2, params))
    ref2 = ncf_reference(user_idx2, item_idx2, params)
    assert out2.shape == (batch2,)
    assert jnp.allclose(out2, ref2, atol=ATOL, rtol=ATOL)

    # Explicit small tile to exercise 3 grid steps.
    out3 = jax.block_until_ready(
        ncf_forward(user_idx2, item_idx2, params, tile_b=128))
    assert jnp.allclose(out3, ref2, atol=ATOL, rtol=ATOL)

    print("KERNEL_OK")
</pallas_src>

<mosaic_0001>
module attributes {stable_mosaic.version = 11 : i64} {
  func.func @ncf_kernel(%arg0: i32, %arg1: memref<32x128xbf16, #tpu.memory_space<vmem>>, %arg2: memref<64x32xbf16, #tpu.memory_space<vmem>>, %arg3: memref<64x1xf32, #tpu.memory_space<vmem>>, %arg4: memref<32x64xbf16, #tpu.memory_space<vmem>>, %arg5: memref<32x1xf32, #tpu.memory_space<vmem>>, %arg6: memref<32x1xf32, #tpu.memory_space<vmem>>, %arg7: memref<16x1xf32, #tpu.memory_space<vmem>>, %arg8: memref<1x1xf32, #tpu.memory_space<smem>>, %arg9: memref<1x128xf32, #tpu.memory_space<vmem>>) attributes {dimension_semantics = [#tpu.dimension_semantics<parallel>], iteration_bounds = array<i64: 1>, scalar_prefetch = 0 : i64, scratch_operands = 0 : i64, tpu.core_type = #tpu.core_type<tc>, window_params = [{transform_indices = @transform_0, window_bounds = array<i64: 32, 128>}, {pipeline_mode = #tpu.pipeline_mode<synchronous>, transform_indices = @transform_1, window_bounds = array<i64: 64, 32>}, {pipeline_mode = #tpu.pipeline_mode<synchronous>, transform_indices = @transform_2, window_bounds = array<i64: 64, 1>}, {pipeline_mode = #tpu.pipeline_mode<synchronous>, transform_indices = @transform_3, window_bounds = array<i64: 32, 64>}, {pipeline_mode = #tpu.pipeline_mode<synchronous>, transform_indices = @transform_4, window_bounds = array<i64: 32, 1>}, {pipeline_mode = #tpu.pipeline_mode<synchronous>, transform_indices = @transform_5, window_bounds = array<i64: 32, 1>}, {pipeline_mode = #tpu.pipeline_mode<synchronous>, transform_indices = @transform_6, window_bounds = array<i64: 16, 1>}, {transform_indices = @transform_7, window_bounds = array<i64: 1, 1>}, {transform_indices = @transform_8, window_bounds = array<i64: 1, 128>}]} {
    %c0 = arith.constant 0 : index
    %c0_0 = arith.constant 0 : index
    %0 = vector.load %arg1[%c0, %c0_0] : memref<32x128xbf16, #tpu.memory_space<vmem>>, vector<32x128xbf16>
    %1 = vector.extract_strided_slice %0 {offsets = [0, 0], sizes = [16, 128], strides = [1, 1]} : vector<32x128xbf16> to vector<16x128xbf16>
    %2 = arith.extf %1 : vector<16x128xbf16> to vector<16x128xf32>
    %3 = vector.extract_strided_slice %0 {offsets = [16, 0], sizes = [16, 128], strides = [1, 1]} : vector<32x128xbf16> to vector<16x128xbf16>
    %4 = arith.extf %3 : vector<16x128xbf16> to vector<16x128xf32>
    %5 = arith.mulf %2, %4 : vector<16x128xf32>
    %c0_1 = arith.constant 0 : index
    %c0_2 = arith.constant 0 : index
    %6 = vector.load %arg2[%c0_1, %c0_2] : memref<64x32xbf16, #tpu.memory_space<vmem>>, vector<64x32xbf16>
    %cst = arith.constant dense<0.000000e+00> : vector<64x128xf32>
    %7 = tpu.matmul %6, %0, %cst {dimension_numbers = #tpu.dot_dimension_numbers<[1], [0], [0], [1], [0, 0, 1, 1], [], []>} : vector<64x32xbf16>, vector<32x128xbf16>, vector<64x128xf32> -> vector<64x128xf32>
    %c0_3 = arith.constant 0 : index
    %c0_4 = arith.constant 0 : index
    %8 = vector.load %arg3[%c0_3, %c0_4] : memref<64x1xf32, #tpu.memory_space<vmem>>, vector<64x1xf32>
    %9 = vector.broadcast %8 : vector<64x1xf32> to vector<64x128xf32>
    %10 = arith.addf %7, %9 : vector<64x128xf32>
    %cst_5 = arith.constant 0.000000e+00 : f32
    %11 = vector.broadcast %cst_5 : f32 to vector<64x128xf32>
    %12 = arith.maximumf %10, %11 : vector<64x128xf32>
    %c0_6 = arith.constant 0 : index
    %c0_7 = arith.constant 0 : index
    %13 = vector.load %arg4[%c0_6, %c0_7] : memref<32x64xbf16, #tpu.memory_space<vmem>>, vector<32x64xbf16>
    %14 = arith.truncf %12 : vector<64x128xf32> to vector<64x128xbf16>
    %cst_8 = arith.constant dense<0.000000e+00> : vector<32x128xf32>
    %15 = tpu.matmul %13, %14, %cst_8 {dimension_numbers = #tpu.dot_dimension_numbers<[1], [0], [0], [1], [0, 0, 1, 1], [], []>} : vector<32x64xbf16>, vector<64x128xbf16>, vector<32x128xf32> -> vector<32x128xf32>
    %c0_9 = arith.constant 0 : index
    %c0_10 = arith.constant 0 : index
    %16 = vector.load %arg5[%c0_9, %c0_10] : memref<32x1xf32, #tpu.memory_space<vmem>>, vector<32x1xf32>
    %17 = vector.broadcast %16 : vector<32x1xf32> to vector<32x128xf32>
    %18 = arith.addf %15, %17 : vector<32x128xf32>
    %cst_11 = arith.constant 0.000000e+00 : f32
    %19 = vector.broadcast %cst_11 : f32 to vector<32x128xf32>
    %20 = arith.maximumf %18, %19 : vector<32x128xf32>
    %c0_12 = arith.constant 0 : index
    %c0_13 = arith.constant 0 : index
    %21 = vector.load %arg7[%c0_12, %c0_13] : memref<16x1xf32, #tpu.memory_space<vmem>>, vector<16x1xf32>
    %22 = vector.broadcast %21 : vector<16x1xf32> to vector<16x128xf32>
    %23 = arith.mulf %5, %22 : vector<16x128xf32>
    %cst_14 = arith.constant dense<0.000000e+00> : vector<128xf32>
    %24 = vector.multi_reduction <add>, %23, %cst_14 [0] : vector<16x128xf32> to vector<128xf32>
    %25 = vector.shape_cast %24 : vector<128xf32> to vector<1x128xf32>
    %c0_15 = arith.constant 0 : index
    %c0_16 = arith.constant 0 : index
    %26 = vector.load %arg6[%c0_15, %c0_16] : memref<32x1xf32, #tpu.memory_space<vmem>>, vector<32x1xf32>
    %27 = vector.broadcast %26 : vector<32x1xf32> to vector<32x128xf32>
    %28 = arith.mulf %20, %27 : vector<32x128xf32>
    %cst_17 = arith.constant dense<0.000000e+00> : vector<128xf32>
    %29 = vector.multi_reduction <add>, %28, %cst_17 [0] : vector<32x128xf32> to vector<128xf32>
    %30 = vector.shape_cast %29 : vector<128xf32> to vector<1x128xf32>
    %31 = arith.addf %25, %30 : vector<1x128xf32>
    %c0_18 = arith.constant 0 : index
    %c0_19 = arith.constant 0 : index
    %32 = memref.load %arg8[%c0_18, %c0_19] : memref<1x1xf32, #tpu.memory_space<smem>>
    %33 = vector.broadcast %32 : f32 to vector<1x128xf32>
    %34 = arith.addf %31, %33 : vector<1x128xf32>
    %35 = arith.negf %34 : vector<1x128xf32>
    %36 = math.exp %35 : vector<1x128xf32>
    %cst_20 = arith.constant 1.000000e+00 : f32
    %37 = vector.broadcast %cst_20 : f32 to vector<1x128xf32>
    %38 = arith.addf %37, %36 : vector<1x128xf32>
    %39 = arith.divf %37, %38 : vector<1x128xf32>
    %c0_21 = arith.constant 0 : index
    %c0_22 = arith.constant 0 : index
    %40 = vector.load %arg9[%c0_21, %c0_22] : memref<1x128xf32, #tpu.memory_space<vmem>>, vector<1x128xf32>
    tpu.vector_store %arg9[%c0_21, %c0_22], %39 {strides = array<i32>} : memref<1x128xf32, #tpu.memory_space<vmem>>, vector<1x128xf32>,
    return
  }
  func.func @transform_0(%arg0: i32) -> (i32, i32) {
    %c0_i32 = arith.constant 0 : i32
    %c0_i32_0 = arith.constant 0 : i32
    return %c0_i32, %arg0 : i32, i32
  }
  func.func @transform_1(%arg0: i32) -> (i32, i32) {
    %c0_i32 = arith.constant 0 : i32
    %c0_i32_0 = arith.constant 0 : i32
    %c0_i32_1 = arith.constant 0 : i32
    return %c0_i32, %c0_i32_0 : i32, i32
  }
  func.func @transform_2(%arg0: i32) -> (i32, i32) {
    %c0_i32 = arith.constant 0 : i32
    %c0_i32_0 = arith.constant 0 : i32
    %c0_i32_1 = arith.constant 0 : i32
    return %c0_i32, %c0_i32_0 : i32, i32
  }
  func.func @transform_3(%arg0: i32) -> (i32, i32) {
    %c0_i32 = arith.constant 0 : i32
    %c0_i32_0 = arith.constant 0 : i32
    %c0_i32_1 = arith.constant 0 : i32
    return %c0_i32, %c0_i32_0 : i32, i32
  }
  func.func @transform_4(%arg0: i32) -> (i32, i32) {
    %c0_i32 = arith.constant 0 : i32
    %c0_i32_0 = arith.constant 0 : i32
    %c0_i32_1 = arith.constant 0 : i32
    return %c0_i32, %c0_i32_0 : i32, i32
  }
  func.func @transform_5(%arg0: i32) -> (i32, i32) {
    %c0_i32 = arith.constant 0 : i32
    %c0_i32_0 = arith.constant 0 : i32
    %c0_i32_1 = arith.constant 0 : i32
    return %c0_i32, %c0_i32_0 : i32, i32
  }
  func.func @transform_6(%arg0: i32) -> (i32, i32) {
    %c0_i32 = arith.constant 0 : i32
    %c0_i32_0 = arith.constant 0 : i32
    %c0_i32_1 = arith.constant 0 : i32
    return %c0_i32, %c0_i32_0 : i32, i32
  }
  func.func @transform_7(%arg0: i32) -> (i32, i32) {
    %c0_i32 = arith.constant 0 : i32
    %c0_i32_0 = arith.constant 0 : i32
    %c0_i32_1 = arith.constant 0 : i32
    return %c0_i32, %c0_i32_0 : i32, i32
  }
  func.func @transform_8(%arg0: i32) -> (i32, i32) {
    %c0_i32 = arith.constant 0 : i32
    %c0_i32_0 = arith.constant 0 : i32
    return %c0_i32, %arg0 : i32, i32
  }
}

</mosaic_0001>

<bundles_post_ra>
// kernel: tpu_custom_call.1
= control target key start
LH: loop header
LB: loop body
LE: loop exit
PB: predicated region body
PF: predicated region fallthrough
CT: control target
= control target key end

     0   :  { %vm130_vm0 = vcmask 261120   ;;  %v494_v3 = vmov 0   ;;  %s640_s0 = inlined_call_operand.vmem [shape: bf16[32,128], index: 0, kind: input, shape index: {}]   ;;  %s641_s1 = inlined_call_operand.vmem [shape: bf16[64,32], index: 1, kind: input, shape index: {}]   ;;  %s642_s2 = inlined_call_operand.vmem [shape: f32[64,1], index: 2, kind: input, shape index: {}]   ;;  %s643_s3 = inlined_call_operand.vmem [shape: bf16[32,64], index: 3, kind: input, shape index: {}]   ;;  %s644_s4 = inlined_call_operand.vmem [shape: f32[32,1], index: 4, kind: input, shape index: {}]   ;;  %s645_s5 = inlined_call_operand.vmem [shape: f32[32,1], index: 5, kind: input, shape index: {}]   ;;  %s646_s6 = inlined_call_operand.vmem [shape: f32[16,1], index: 6, kind: input, shape index: {}]   ;;  %s647_s7 = inlined_call_operand.<no memory space> [shape: f32[1,1], index: 7, kind: input, shape index: {}]   ;;  %s648_s8 = inlined_call_operand.hbm [shape: f32[1,128], index: 8, kind: output, shape index: {}]  }
   0x1   :  { %v32_v0 = vld [vmem:[%s640_s0] sm:$0xff]   ;;  %v34_v1 = vld [vmem:[%s640_s0 + $0x8] sm:$0xff]   ;;  %454 = vset.pattern.permute.xlu0 %v494_v3  ;;  %455 = vset.pattern.permute.xlu1 %v494_v3  ;;  %v52_v5 = vld [vmem:[%s642_s2 + $0x10] sm:$0xff] }
   0x2   :  { %v458_v2 = vld [vmem:[%s641_s1] sm:$0xff]   ;;  %428 = vmatprep.subr.bf16.mxu0 %v32_v0  ;;  %70 = vperm.xlu1 %455, %v52_v5   ;;  %v51_v6 = vld [vmem:[%s642_s2 + $0x8] sm:$0xff]  ;;  %v53_v8 = vld [vmem:[%s642_s2 + $0x18] sm:$0xff] }
   0x3   :  { %432 = vmatprep.mubr.msk.bf16.mxu0 %vm130_vm0, %v458_v2  ;;  %429 = vmatpush3.bf16.msra.mxu0 %v32_v0  ;;  %v50_v4 = vld [vmem:[%s642_s2] sm:$0xff]  ;;  %v459_v7 = vld [vmem:[%s641_s1 + $0x8] sm:$0xff]   ;;  %v460_v9 = vld [vmem:[%s641_s1 + $0x10] sm:$0xff]  }
   0x4   :  { %430 = vmatprep.subr.bf16.mxu0 %v34_v1  ;;  %60 = vperm.xlu0 %454, %v50_v4   ;;  %v54_v10 = vld [vmem:[%s642_s2 + $0x20] sm:$0xff]  ;;  %v55_v11 = vld [vmem:[%s642_s2 + $0x28] sm:$0xff] }
   0x6   :  { %75 = vperm.xlu1 %455, %v53_v8  }
   0x7   :  { %431 = vmatpush3.bf16.msra.mxu0 %v34_v1 }
   0x8   :  { %65 = vperm.xlu0 %454, %v51_v6  }
   0xa   :  { %433 = vmatmul.mubr.msk.bf16.vlgmr.msra.gmra.mrb[0].mxu0 %vm130_vm0, %v459_v7 }
   0xb   :  { %436 = vmatprep.mubr.msk.bf16.mxu0 %vm130_vm0, %v460_v9 }
   0xc   :  { %14 = vsyncpa [#allocation4], 0  ;;  %80 = vperm.xlu0 %454, %v54_v10   ;;  %85 = vperm.xlu1 %455, %v55_v11   ;;  %v56_v12 = vld [vmem:[%s642_s2 + $0x30] sm:$0xff]  ;;  %v461_v13 = vld [vmem:[%s641_s1 + $0x18] sm:$0xff]   ;;  %v36_v22 = vunpack.c.l.bf16 %v32_v0  ;;  %v38_v24 = vunpack.c.l.bf16 %v34_v1  ;;  %v37_v25 = vunpack.c.h.bf16 %v32_v0  ;;  %v39_v29 = vunpack.c.h.bf16 %v34_v1  ;;  %s495_s29 = smov [#allocation3]  }
   0xd   :  { %v57_v14 = vld [vmem:[%s642_s2 + $0x38] sm:$0xff]  ;;  %v224_v15 = vld [vmem:[%s644_s4] sm:$0xff]  ;;  %v225_v16 = vld [vmem:[%s644_s4 + $0x8] sm:$0xff]  ;;  %vm258_vm1 = vcmask 523264   ;;  %s393_s30 = sshll.u32 %s495_s29, 4  ;;  %s394_s30 = int_to_ptr.vmem [resolvable:$true] %s393_s30 }
   0xe   :  { %v226_v17 = vld [vmem:[%s644_s4 + $0x10] sm:$0xff]  ;;  %v227_v18 = vld [vmem:[%s644_s4 + $0x18] sm:$0xff]  ;;  %v339_v19 = vld [vmem:[%s645_s5] sm:$0xff]  ;;  %v40_v28 = vmul.f32 %v38_v24, %v36_v22  ;;  %v41_v30 = vmul.f32 %v39_v29, %v37_v25  ;;  %s470_s9 = scalar_lea.vmem %s394_s30, 16  ;;  %s474_s10 = scalar_lea.vmem %s394_s30, 32 }
   0xf   :  { %v340_v20 = vld [vmem:[%s645_s5 + $0x8] sm:$0xff]  ;;  %v341_v21 = vld [vmem:[%s645_s5 + $0x10] sm:$0xff]  ;;  %v318_v23 = vld [vmem:[%s646_s6] sm:$0xff]  ;;  %p471_p0 = scmp.ne.s32.totalorder %s394_s30, %s470_s9  ;;  %p475_p1 = scmp.lt.s32.totalorder %s394_s30, %s394_s30 }
  0x10   :  { %90 = vperm.xlu0 %454, %v56_v12   ;;  %95 = vperm.xlu1 %455, %v57_v14   ;;  %v319_v26 = vld [vmem:[%s646_s6 + $0x8] sm:$0xff]  ;;  %v342_v27 = vld [vmem:[%s645_s5 + $0x18] sm:$0xff]  ;;  %v462_v31 = vld [vmem:[%s643_s3] sm:$0xff]   ;;  %p476_p2 = scmp.lt.s32.totalorder %s474_s10, %s470_s9 }
  0x11   :  { %448 = vmatprep.mubr.msk.bf16.mxu1 %vm258_vm1, %v462_v31 }
  0x12   :  { %437 = vmatmul.mubr.msk.bf16.gmra.mrb[4].mxu0 %vm130_vm0, %v461_v13  ;;  %p477_p3 = por %p476_p2, %p475_p1 }
  0x14   :  { %230 = vperm.xlu0 %454, %v224_v15   ;;  %235 = vperm.xlu1 %455, %v225_v16   ;;  %v463_v16 = vld [vmem:[%s643_s3 + $0x8] sm:$0xff]   ;;  %p478_p4 = pnand %p477_p3, %p471_p0 }
  0x18   :  { %240 = vperm.xlu0 %454, %v226_v17   ;;  %245 = vperm.xlu1 %455, %v227_v18  }
  0x1c   :  { %345 = vperm.xlu0 %454, %v339_v19   ;;  %350 = vperm.xlu1 %455, %v340_v20  }
  0x20   :  { %355 = vperm.xlu0 %454, %v341_v21   ;;  %322 = vperm.xlu1 %455, %v318_v23  }
  0x24   :  { %327 = vperm.xlu0 %454, %v319_v26   ;;  %360 = vperm.xlu1 %455, %v342_v27  }
  0x81   :  { %v71_v33 = vpop.permute.xlu1 %70 }
  0x83   :  { %v61_v32 = vpop.permute.xlu0 %60 }
  0x85   :  { %v76_v35 = vpop.permute.xlu1 %75 }
  0x87   :  { %v66_v34 = vpop.permute.xlu0 %65 }
  0x8b   :  { %v81_v36 = vpop.permute.xlu0 %80  ;;  %v86_v37 = vpop.permute.xlu1 %85 }
  0x8f   :  { %v91_v38 = vpop.permute.xlu0 %90  ;;  %v96_v39 = vpop.permute.xlu1 %95 }
  0x93   :  { %v231_v40 = vpop.permute.xlu0 %230  ;;  %v236_v41 = vpop.permute.xlu1 %235 }
  0x97   :  { %v241_v42 = vpop.permute.xlu0 %240  ;;  %v246_v43 = vpop.permute.xlu1 %245 }
  0x9b   :  { %v346_v44 = vpop.permute.xlu0 %345  ;;  %v351_v45 = vpop.permute.xlu1 %350 }
  0x9f   :  { %v356_v46 = vpop.permute.xlu0 %355  ;;  %v323_v47 = vpop.permute.xlu1 %322 }
  0xa0   :  { %v330_v48 = vmul.f32 %v323_v47, %v40_v28 }
  0xa3   :  { %v328_v49 = vpop.permute.xlu0 %327 }
  0xa4   :  { %v331_v50 = vmul.f32 %v328_v49, %v41_v30 }
  0xa6   :  { %v332_v51 = vadd.f32 %v331_v50, %v330_v48 }
  0xa8   :  { %v333_v26 = vrot.slane %v332_v51, 4 }
  0xdd   :  { %v434_v52 = vpop.f32.mrb[0].mxu0 }
  0xde   :  { %v186_v53 = vadd.f32 %v434_v52, %v71_v33  ;;  %v177_v54 = vpop.f32.mrb[1].mxu0 }
  0xdf   :  { %v178_v55 = vadd.f32 %v177_v54, %v61_v32  ;;  %v435_v56 = vpop.f32.mrb[2].mxu0  ;;  %v334_v32 = vadd.f32 %v333_v26, %v332_v51 }
  0xe0   :  { %v189_v57 = vadd.f32 %v435_v56, %v76_v35  ;;  %v180_v58 = vpop.f32.mrb[3].mxu0  ;;  %v210_v60 = vmax.f32 %v186_v53, 0.0  ;;  %v361_v35 = vpop.permute.xlu1 %360 }
  0xe1   :  { %v181_v59 = vadd.f32 %v180_v58, %v66_v34  ;;  %v208_v62 = vmax.f32 %v178_v55, 0.0 }
  0xe2   :  { %v211_v61 = vmax.f32 %v189_v57, 0.0 }
  0xe3   :  { %v209_v63 = vmax.f32 %v181_v59, 0.0 }
  0xe4   :  { %v221_v0 = vpack.c.bf16 %v211_v61, %v210_v60 }
  0xe5   :  { %v438_v1 = vpop.f32.mrb[4].mxu0  ;;  %v220_v2 = vpack.c.bf16 %v209_v63, %v208_v62 }
  0xe6   :  { %v202_v3 = vadd.f32 %v438_v1, %v91_v38  ;;  %v193_v4 = vpop.f32.mrb[5].mxu0  ;;  %v335_v38 = vrot.slane %v334_v32, 2 }
  0xe7   :  { %v194_v5 = vadd.f32 %v193_v4, %v81_v36  ;;  %v439_v6 = vpop.f32.mrb[6].mxu0  ;;  %440 = vmatprep.subr.bf16.mxu1 %v220_v2 }
  0xe8   :  { %v205_v7 = vadd.f32 %v439_v6, %v96_v39  ;;  %v196_v8 = vpop.f32.mrb[7].mxu0  ;;  %441 = vmatpush3.bf16.msra.mxu1 %v220_v2  ;;  %v214_v10 = vmax.f32 %v202_v3, 0.0 }
  0xe9   :  { %v197_v9 = vadd.f32 %v196_v8, %v86_v37  ;;  %442 = vmatprep.subr.bf16.mxu1 %v221_v0  ;;  %v212_v12 = vmax.f32 %v194_v5, 0.0 }
  0xea   :  { %v215_v11 = vmax.f32 %v205_v7, 0.0 }
  0xeb   :  { %v213_v13 = vmax.f32 %v197_v9, 0.0 }
  0xec   :  { %v223_v14 = vpack.c.bf16 %v215_v11, %v214_v10  ;;  %443 = vmatpush3.bf16.msra.mxu1 %v221_v0 }
  0xed   :  { %v222_v15 = vpack.c.bf16 %v213_v13, %v212_v12 }
  0xef   :  { %444 = vmatprep.subr.bf16.mxu1 %v222_v15 }
  0xf0   :  { %445 = vmatpush3.bf16.msra.mxu1 %v222_v15 }
  0xf1   :  { %446 = vmatprep.subr.bf16.mxu1 %v223_v14 }
  0xf4   :  { %447 = vmatpush3.bf16.msra.mxu1 %v223_v14 }
  0xf7   :  { %449 = vmatmul.mubr.msk.bf16.vlgmr.msra.gmra.mrb[0].mxu1 %vm258_vm1, %v463_v16 }
 0x1ca   :  { %v450_v17 = vpop.f32.mrb[0].mxu1 }
 0x1cb   :  { %v299_v18 = vpop.f32.mrb[1].mxu1  ;;  %v308_v19 = vadd.f32 %v450_v17, %v241_v42  ;;  %v336_v42 = vadd.f32 %v335_v38, %v334_v32 }
 0x1cc   :  { %v300_v20 = vadd.f32 %v299_v18, %v231_v40  ;;  %v451_v21 = vpop.f32.mrb[2].mxu1 }
 0x1cd   :  { %v302_v22 = vpop.f32.mrb[3].mxu1  ;;  %v311_v24 = vadd.f32 %v451_v21, %v246_v43  ;;  %v316_v27 = vmax.f32 %v308_v19, 0.0  ;;  %v337_v43 = vrot.slane %v336_v42, 1 }
 0x1ce   :  { %v314_v23 = vmax.f32 %v300_v20, 0.0  ;;  %v303_v25 = vadd.f32 %v302_v22, %v236_v41 }
 0x1cf   :  { %v317_v30 = vmax.f32 %v311_v24, 0.0  ;;  %v365_v33 = vmul.f32 %v356_v46, %v316_v27  ;;  %v338_v50 = vadd.f32 %v337_v43, %v336_v42 }
 0x1d0   :  { %v315_v28 = vmax.f32 %v303_v25, 0.0  ;;  %v363_v29 = vmul.f32 %v346_v44, %v314_v23  ;;  %v378_v44 = vstv %s647_s7 }
 0x1d1   :  { %v366_v36 = vmul.f32 %v361_v35, %v317_v30 }
 0x1d2   :  { %v364_v31 = vmul.f32 %v351_v45, %v315_v28 }
 0x1d4   :  { %v367_v34 = vadd.f32 %v364_v31, %v363_v29 }
 0x1d6   :  { %v368_v37 = vadd.f32 %v367_v34, %v365_v33 }
 0x1d8   :  { %v369_v39 = vadd.f32 %v368_v37, %v366_v36 }
 0x1da   :  { %v370_v40 = vrot.slane %v369_v39, 4 }
 0x1dc   :  { %v371_v47 = vadd.f32 %v370_v40, %v369_v39 }
 0x1de   :  { %v372_v48 = vrot.slane %v371_v47, 2 }
 0x1e0   :  { %v373_v41 = vadd.f32 %v372_v48, %v371_v47 }
 0x1e2   :  { %v374_v49 = vrot.slane %v373_v41, 1 }
 0x1e4   :  { %v375_v52 = vadd.f32 %v374_v49, %v373_v41 }
 0x1e6   :  { %v376_v45 = vadd.f32 %v375_v52, %v338_v50 }
 0x1e8   :  { %v379_v46 = vadd.f32 %v378_v44, %v376_v45 }
 0x1ea   :  { %v415_v51 = vmul.f32 -1.442695, %v379_v46 }
 0x1ec   :  { %466 = vpow2.f32 %v415_v51 }
 0x1f6   :  { %v467_v53 = vpop.eup %466 }
 0x1f7   :  { %v383_v54 = vadd.f32 1.0, %v467_v53 }
 0x1f9   :  { %468 = vrcp.f32 %v383_v54 }
 0x203   :  { %v469_v55 = vpop.eup %468 }
 0x204   :  { %386 = vst [vmem:[#allocation3] sm:$0x1] %v469_v55 }
 0x205   :  { %481 = shalt.err (!%p478_p4)
}
 0x206   :  { %s482_s12 = scalar_lea.hbm %s648_s8, 16 }
 0x207   :  { %p483_p5 = scmp.ne.s32.totalorder %s648_s8, %s482_s12  ;;  %p486_p6 = scmp.lt.u32.totalorder %s482_s12, %s648_s8 }
 0x209   :  { %p488_p7 = pnand %p486_p6, %p483_p5 }
 0x20b   :  { %491 = shalt.err (!%p488_p7)
}
 0x20c   :  { %396 = dma.vmem_to_hbm [thread:$0]  %s394_s30, 16, %s648_s8, [#allocation4]  }
 0x20d   :  { %492 = dma.done.wait [#allocation4], 16  }
 0x20e   :  { %493 = vsyncadd [#allocation4], 4294967280 }
 0x20f   :  { %400 = vsyncpa [#allocation4], 1 }

</bundles_post_ra>
